<compile_context>
chip_gen: v5e
topology: v5e:2x2
jax: 0.10.0
libtpu: 0.0.40
codegen_flags: <defaults>
</compile_context>

<pallas_src>
import jax
import jax.numpy as jnp
from jax.experimental import pallas as pl
from jax.experimental.pallas import tpu as pltpu

_LANE = 128
_SUBLANE_32 = 8
_SMALL_INPUT_BYTES = 1 * 1024 * 1024  # below this, plain XLA fusion is faster


def _sum_kernel(imgs_ref, texts_ref, out_ref):
    # Elementwise add on the VPU; dtype promotion done in-kernel so the
    # wrapper never pays an extra HBM read+write for an astype.
    out_ref[...] = (imgs_ref[...].astype(out_ref.dtype)
                    + texts_ref[...].astype(out_ref.dtype))


def _vmem_budget_bytes():
    """Returns (tile_budget, vmem_limit), generation aware.

    tile_budget covers all pipelined buffers (3 arrays x 2 buffers x tile).
    """
    try:
        cap = int(pltpu.get_tpu_info().vmem_capacity_bytes)
    except Exception:
        cap = 64 * 1024 * 1024  # assume the smallest (v7x-class) VMEM
    if cap >= 128 * 1024 * 1024:
        # v5e / v6e: 128 MiB physical VMEM -> generous scoped limit is safe.
        return 48 * 1024 * 1024, 64 * 1024 * 1024
    # v7x-class: 64 MiB per TC -> leave ~8 MiB headroom under the limit.
    return 44 * 1024 * 1024, 56 * 1024 * 1024


def _sublane_align(*dtypes):
    """Dtype-aware sublane alignment: 8 for 32-bit, 16 for bf16, 32 for int8."""
    min_itemsize = min(jnp.dtype(d).itemsize for d in dtypes)
    return _SUBLANE_32 * max(1, 4 // max(1, min_itemsize))


def sum_forward(imgs, texts, *, min_pallas_bytes=_SMALL_INPUT_BYTES):
    """Pallas equivalent of Sum.forward.

    imgs:  [B, D]
    texts: [B, D] or [B, 1, D] (extra singleton dim squeezed, matching torch).
    """
    # --- PyTorch glue: squeeze(1) when texts has an extra dim --------------
    if texts.ndim > 2:
        texts = jnp.squeeze(texts, axis=1)

    # --- PyTorch glue: torch `imgs + texts` broadcasts ---------------------
    out_shape = jnp.broadcast_shapes(imgs.shape, texts.shape)
    if imgs.shape != out_shape:
        imgs = jnp.broadcast_to(imgs, out_shape)
    if texts.shape != out_shape:
        texts = jnp.broadcast_to(texts, out_shape)

    # TODO(synk): jnp.result_type may differ from torch promotion for exotic
    # mixed int/float dtype combos; identical for same-dtype / float inputs.
    out_dtype = jnp.result_type(imgs.dtype, texts.dtype)

    # The module's inputs are 2D after the squeeze; anything else -> plain add.
    if len(out_shape) != 2:
        return (imgs.astype(out_dtype) + texts.astype(out_dtype))
    B, D = out_shape

    # --- small / narrow-lane fallback: XLA fusion beats a pallas_call ------
    out_bytes = B * D * jnp.dtype(out_dtype).itemsize
    if out_bytes < min_pallas_bytes or D < _LANE:
        # TODO(synk): D < 128 could instead be reshaped to a lane-dense slab.
        return (imgs.astype(out_dtype) + texts.astype(out_dtype))

    # ---- tile selection against the generation-specific VMEM budget -------
    budget, vmem_limit = _vmem_budget_bytes()
    sublane = _sublane_align(imgs.dtype, texts.dtype, out_dtype)
    bytes_per_elem = 2 * (jnp.dtype(imgs.dtype).itemsize      # double-buffered
                          + jnp.dtype(texts.dtype).itemsize
                          + jnp.dtype(out_dtype).itemsize)

    min_rows = min(B, sublane)
    rows_full_width = budget // (D * bytes_per_elem)  # rows that fit with TD=D

    if rows_full_width >= min_rows:
        # Preferred path: full-row contiguous tiles, 1D grid over rows.
        TD = D
        if B <= sublane:
            TB = B                                       # full (small) extent
        else:
            b_cap = (B // sublane) * sublane             # aligned, <= B
            TB = min(b_cap, max(sublane, (rows_full_width // sublane) * sublane))
    else:
        # A sublane-group of full rows exceeds the budget (huge D): split cols.
        TB = min(B, sublane)
        max_cols = max(_LANE,
                       ((budget // (TB * bytes_per_elem)) // _LANE) * _LANE)
        TD = max(_LANE, min((D // _LANE) * _LANE, max_cols))

    g_rows = pl.cdiv(B, TB)
    g_cols = pl.cdiv(D, TD)

    if g_cols == 1:
        grid = (g_rows,)
        block = pl.BlockSpec((TB, TD), lambda i: (i, 0))
        dims = ("parallel",)
    elif g_rows >= g_cols:
        grid = (g_rows, g_cols)
        block = pl.BlockSpec((TB, TD), lambda i, j: (i, j))
        dims = ("parallel", "parallel")
    else:
        # Larger axis first so a 2-TC (v7x) megacore split stays balanced.
        grid = (g_cols, g_rows)
        block = pl.BlockSpec((TB, TD), lambda j, i: (i, j))
        dims = ("parallel", "parallel")

    return pl.pallas_call(
        _sum_kernel,
        out_shape=jax.ShapeDtypeStruct((B, D), out_dtype),
        grid=grid,
        in_specs=[block, block],
        out_specs=block,
        compiler_params=pltpu.CompilerParams(
            dimension_semantics=dims,
            vmem_limit_bytes=vmem_limit,
        ),
    )(imgs, texts)


if __name__ == "__main__":
    key = jax.random.PRNGKey(0)
    k_imgs, k_texts = jax.random.split(key)

    # Small, module-consistent shapes: imgs [B, D], texts [B, 1, D] to
    # exercise the squeeze(1) branch. Lane-dense D (multiple of 128).
    B, D = 16, 256
    imgs = jax.random.normal(k_imgs, (B, D), dtype=jnp.float32)
    texts = jax.random.normal(k_texts, (B, 1, D), dtype=jnp.float32)

    # min_pallas_bytes=0 forces the Pallas path even at this demo size
    # (the default threshold would correctly route tiny inputs to XLA).
    out = sum_forward(imgs, texts, min_pallas_bytes=0)
    out = jax.block_until_ready(out)

    # Reference check against plain JAX.
    ref = imgs + jnp.squeeze(texts, axis=1)
    assert out.shape == (B, D)
    assert out.dtype == ref.dtype
    assert jnp.allclose(out, ref, atol=1e-6), "mismatch vs reference"

    print("KERNEL_OK")
</pallas_src>

<mosaic_0001>
module attributes {stable_mosaic.version = 11 : i64} {
  func.func @_sum_kernel(%arg0: i32, %arg1: memref<16x256xf32, #tpu.memory_space<vmem>>, %arg2: memref<16x256xf32, #tpu.memory_space<vmem>>, %arg3: memref<16x256xf32, #tpu.memory_space<vmem>>) attributes {dimension_semantics = [#tpu.dimension_semantics<parallel>], iteration_bounds = array<i64: 1>, scalar_prefetch = 0 : i64, scratch_operands = 0 : i64, tpu.core_type = #tpu.core_type<tc>, window_params = [{transform_indices = @transform_0, window_bounds = array<i64: 16, 256>}, {transform_indices = @transform_1, window_bounds = array<i64: 16, 256>}, {transform_indices = @transform_2, window_bounds = array<i64: 16, 256>}]} {
    %c0 = arith.constant 0 : index
    %c0_0 = arith.constant 0 : index
    %0 = vector.load %arg1[%c0, %c0_0] : memref<16x256xf32, #tpu.memory_space<vmem>>, vector<16x256xf32>
    %c0_1 = arith.constant 0 : index
    %c0_2 = arith.constant 0 : index
    %1 = vector.load %arg2[%c0_1, %c0_2] : memref<16x256xf32, #tpu.memory_space<vmem>>, vector<16x256xf32>
    %2 = arith.addf %0, %1 : vector<16x256xf32>
    %c0_3 = arith.constant 0 : index
    %c0_4 = arith.constant 0 : index
    %3 = vector.load %arg3[%c0_3, %c0_4] : memref<16x256xf32, #tpu.memory_space<vmem>>, vector<16x256xf32>
    tpu.vector_store %arg3[%c0_3, %c0_4], %2 {strides = array<i32>} : memref<16x256xf32, #tpu.memory_space<vmem>>, vector<16x256xf32>,
    return
  }
  func.func @transform_0(%arg0: i32) -> (i32, i32) {
    %c0_i32 = arith.constant 0 : i32
    %c0_i32_0 = arith.constant 0 : i32
    return %arg0, %c0_i32 : i32, i32
  }
  func.func @transform_1(%arg0: i32) -> (i32, i32) {
    %c0_i32 = arith.constant 0 : i32
    %c0_i32_0 = arith.constant 0 : i32
    return %arg0, %c0_i32 : i32, i32
  }
  func.func @transform_2(%arg0: i32) -> (i32, i32) {
    %c0_i32 = arith.constant 0 : i32
    %c0_i32_0 = arith.constant 0 : i32
    return %arg0, %c0_i32 : i32, i32
  }
}

</mosaic_0001>

<bundles_post_ra>
// kernel: tpu_custom_call.1
= control target key start
LH: loop header
LB: loop body
LE: loop exit
PB: predicated region body
PF: predicated region fallthrough
CT: control target
= control target key end

     0   :  { %7 = vsyncpa [#allocation3], 0  ;;  %s201_s0 = inlined_call_operand.hbm [shape: f32[16,256], index: 0, kind: input, shape index: {}]   ;;  %s202_s1 = inlined_call_operand.hbm [shape: f32[16,256], index: 1, kind: input, shape index: {}]   ;;  %s203_s2 = inlined_call_operand.hbm [shape: f32[16,256], index: 2, kind: output, shape index: {}]  }
   0x1   :  { %8 = vsyncpa [#allocation6], 0 }
   0x2   :  { %9 = vsyncpa [#allocation4], 0  ;;  %s14_s11 = sshll.u32 %s201_s0, 4  ;;  %s163_s12 = smov [#allocation2]   ;;  %s15_s11 = int_to_ptr.hbm [resolvable:$true] %s14_s11 }
   0x3   :  { %s16_s13 = sshll.u32 %s163_s12, 4  ;;  %s27_s16 = sshll.u32 %s202_s1, 4  ;;  %s17_s13 = int_to_ptr.vmem [resolvable:$true] %s16_s13  ;;  %s28_s16 = int_to_ptr.hbm [resolvable:$true] %s27_s16 }
   0x4   :  { %s164_s17 = smov 256   ;;  %s165_s18 = smov 16  }
   0x5   :  { %22 = dma.hbm_to_vmem [thread:$0]  %s15_s11, 512, %s17_s13, [#allocation3], %s164_s17, %s164_s17, %s165_s18  }
   0x6   :  { %s166_s19 = smov [#allocation5]  }
   0x7   :  { %s29_s20 = sshll.u32 %s166_s19, 4  ;;  %s30_s20 = int_to_ptr.vmem [resolvable:$true] %s29_s20 }
   0x8   :  { %35 = dma.hbm_to_vmem [thread:$0]  %s28_s16, 512, %s30_s20, [#allocation6], %s164_s17, %s164_s17, %s165_s18  }
   0x9   :  { %157 = dma.done.wait [#allocation3], 512  }
   0xa   :  { %158 = vsyncadd [#allocation3], 4294966784 }
   0xb   :  { %159 = dma.done.wait [#allocation6], 512  }
   0xc   :  { %160 = vsyncadd [#allocation6], 4294966784  ;;  %v44_v0 = vld [vmem:[#allocation2] sm:$0xff]  ;;  %v45_v2 = vld [vmem:[#allocation2 + $0x8] sm:$0xff]  ;;  %s167_s0 = smov [#allocation7]   ;;  %s66_s23 = sshll.u32 %s203_s2, 4  ;;  %s67_s23 = int_to_ptr.hbm [resolvable:$true] %s66_s23 }
   0xd   :  { %v48_v1 = vld [vmem:[#allocation5] sm:$0xff]  ;;  %v49_v4 = vld [vmem:[#allocation5 + $0x8] sm:$0xff]  ;;  %v46_v5 = vld [vmem:[#allocation2 + $0x10] sm:$0xff]  ;;  %s64_s1 = sshll.u32 %s167_s0, 4  ;;  %s65_s1 = int_to_ptr.vmem [resolvable:$true] %s64_s1 }
   0xe   :  { %v52_v3 = vadd.f32 %v48_v1, %v44_v0  ;;  %v50_v6 = vld [vmem:[#allocation5 + $0x10] sm:$0xff]  ;;  %v53_v7 = vadd.f32 %v49_v4, %v45_v2  ;;  %v47_v9 = vld [vmem:[#allocation2 + $0x18] sm:$0xff] }
   0xf   :  { %v54_v8 = vadd.f32 %v50_v6, %v46_v5  ;;  %v51_v10 = vld [vmem:[#allocation5 + $0x18] sm:$0xff] }
  0x10   :  { %56 = vst [vmem:[#allocation7] sm:$0xff] %v52_v3  ;;  %v55_v11 = vadd.f32 %v51_v10, %v47_v9 }
  0x11   :  { %57 = vst [vmem:[#allocation7 + $0x8] sm:$0xff] %v53_v7 }
  0x12   :  { %58 = vst [vmem:[#allocation7 + $0x10] sm:$0xff] %v54_v8 }
  0x13   :  { %59 = vst [vmem:[#allocation7 + $0x18] sm:$0xff] %v55_v11 }
  0x14   :  { %72 = dma.vmem_to_hbm [thread:$0]  %s65_s1, 512, %s67_s23, [#allocation4], %s164_s17, %s164_s17, %s165_s18  }
  0x15   :  { %161 = dma.done.wait [#allocation4], 512  }
  0x16   :  { %162 = vsyncadd [#allocation4], 4294966784 }
  0x17   :  { %77 = vsyncpa [#allocation3], 1 }
  0x18   :  { %78 = vsyncpa [#allocation6], 1 }
  0x19   :  { %79 = vsyncpa [#allocation4], 1 }

</bundles_post_ra>
